<compile_context>
chip_gen: v6e
topology: v6e:2x2x1
jax: 0.10.0
libtpu: 0.0.40
codegen_flags: <defaults>
</compile_context>

<pallas_src>
import functools

import jax
import jax.numpy as jnp
from jax.experimental import pallas as pl
from jax.experimental.pallas import tpu as pltpu

K_SIZE = 3                      # ECA kernel size (PyTorch default k_size=3)
_LANE = 128
_MAX_UNROLL_LANE_TILES = 512    # bound on statically-unrolled lane-tile adds


# ---------------------------------------------------------------------------
# Generation-aware VMEM sizing.
# ---------------------------------------------------------------------------
def _tpu_vmem_capacity_bytes():
    try:
        return int(pltpu.get_tpu_info().vmem_capacity_bytes)
    except Exception:
        return 64 << 20         # conservative default (v7x per-TC VMEM)


def _vmem_limit(pipelined_bytes, capacity):
    """Explicit scoped-VMEM request: pipelined buffers + headroom, clamped per chip."""
    lo = 32 << 20
    hi = max(lo, capacity - (16 << 20))     # ~112 MiB on 128-MiB parts, ~48 MiB on v7x
    return int(min(hi, max(lo, pipelined_bytes + (4 << 20))))


# ---------------------------------------------------------------------------
# Reduction helpers: keep the spatial mean on the VPU, not the XLU.
# ---------------------------------------------------------------------------
def _lane_partial_sums_f32(x, n_lt):
    """x: (..., n_lt*128) -> (..., 128) f32 partial sums.

    Lane-tile-aligned static slices of x hit distinct vregs of the same layout, so each
    add is a plain VPU elementwise add (no relayout, no XLU). A few independent
    accumulators break the serial dependence chain for ILP."""
    n_par = min(4, n_lt)
    accs = [x[..., j * _LANE:(j + 1) * _LANE].astype(jnp.float32) for j in range(n_par)]
    for j in range(n_par, n_lt):
        accs[j % n_par] = accs[j % n_par] + x[..., j * _LANE:(j + 1) * _LANE].astype(jnp.float32)
    out = accs[0]
    for a in accs[1:]:
        out = out + a
    return out


def _sum_last_f32(x):
    """Sum over the last axis with f32 accumulation: bulk of the work as VPU adds,
    exactly one cross-lane (XLU) reduce at the end."""
    n = x.shape[-1]
    n_lt = n // _LANE
    if (n % _LANE != 0) or n_lt < 2 or n_lt > _MAX_UNROLL_LANE_TILES:
        # Odd / tiny / extremely wide axes: fall back to a plain reduce.
        return jnp.sum(x.astype(jnp.float32), axis=-1)
    return jnp.sum(_lane_partial_sums_f32(x, n_lt), axis=-1)


def _gate_from_mean(y, w_ref):
    """(1, C) f32 channel means -> sigmoid(conv1d_k3_zero_pad(y)), (1, C) f32."""
    C = y.shape[1]
    pad = (K_SIZE - 1) // 2
    ch_idx = jax.lax.broadcasted_iota(jnp.int32, y.shape, dimension=1)   # (1, C)
    conv = jnp.zeros_like(y)
    for j in range(K_SIZE):
        off = j - pad                        # conv[c] += w[j] * y[c + off]
        shift = (-off) % C                   # rolled[c] = y[(c + off) mod C]
        rolled = pltpu.roll(y, shift=shift, axis=1) if shift else y
        valid = (ch_idx + off >= 0) & (ch_idx + off < C)                 # zero padding
        conv = conv + w_ref[j] * jnp.where(valid, rolled, 0.0)
    return jax.nn.sigmoid(conv)


# ---------------------------------------------------------------------------
# Fast path: whole (C, HW) slab resident per batch element (2x HBM traffic).
# ---------------------------------------------------------------------------
def _eca_fused_kernel(w_ref, x_ref, o_ref):
    # x_ref / o_ref: (1, C, HW) VMEM block for one batch element; w_ref: (K,) SMEM.
    hw = x_ref.shape[2]
    x = x_ref[...]                                      # native dtype
    y = _sum_last_f32(x) / jnp.float32(hw)              # (1, C) f32 mean
    s = _gate_from_mean(y, w_ref)                       # (1, C) f32
    # Native-dtype rescale: bf16 slabs stay packed (no full-slab f32 upcast);
    # for f32 this is identical to multiplying in f32.
    o_ref[...] = (x * s.astype(x.dtype)[:, :, None]).astype(o_ref.dtype)


def _eca_single_pass(xf, w, capacity):
    B, C, hw = xf.shape
    block_bytes = C * hw * xf.dtype.itemsize
    return pl.pallas_call(
        _eca_fused_kernel,
        out_shape=jax.ShapeDtypeStruct((B, C, hw), xf.dtype),
        grid=(B,),
        in_specs=[
            pl.BlockSpec(memory_space=pltpu.MemorySpace.SMEM),       # conv1d weights
            pl.BlockSpec((1, C, hw), lambda b: (b, 0, 0)),           # x
        ],
        out_specs=pl.BlockSpec((1, C, hw), lambda b: (b, 0, 0)),
        compiler_params=pltpu.CompilerParams(
            dimension_semantics=("parallel",),
            vmem_limit_bytes=_vmem_limit(4 * block_bytes, capacity)),  # 2 dbl-buffered blocks
    )(w, xf)


# ---------------------------------------------------------------------------
# Fallback: spatially-tiled two-pass (bounded VMEM, many grid steps).
# ---------------------------------------------------------------------------
def _eca_pool_gate_kernel(w_ref, x_ref, g_ref, acc_ref, *, hw):
    t = pl.program_id(1)
    tile = x_ref.shape[2]                 # always a multiple of 128

    @pl.when(t == 0)
    def _():
        acc_ref[...] = jnp.zeros_like(acc_ref)

    x = x_ref[...]
    if hw % tile != 0:
        # The final spatial block is padded past hw with unspecified data; zero it
        # before accumulating (hot, full tiles take the same cheap compare+select).
        idx = jax.lax.broadcasted_iota(jnp.int32, x.shape, dimension=2)
        x = jnp.where(t * tile + idx < hw, x, jnp.zeros_like(x))
    acc_ref[...] += _lane_partial_sums_f32(x, tile // _LANE)             # VPU adds only

    # NOTE: g_ref's block index is constant along t, so the output block stays resident
    # across the whole reduction axis and is written back only after the last step.
    # Keep the reduction axis (t) innermost if this grid is ever reordered.
    @pl.when(t == pl.num_programs(1) - 1)
    def _():
        y = jnp.sum(acc_ref[...], axis=-1) / jnp.float32(hw)   # one XLU reduce per batch
        g_ref[...] = _gate_from_mean(y, w_ref)[:, :, None]                # (1, C, 1)


def _eca_scale_kernel(g_ref, x_ref, o_ref):
    # g_ref: (1, C, 1) f32 gate; x_ref/o_ref: (1, C, tile) in the I/O dtype.
    # Native-dtype multiply; out-of-bounds lanes of a padded tail block are dropped
    # by the masked store.
    o_ref[...] = (x_ref[...] * g_ref[...].astype(x_ref.dtype)).astype(o_ref.dtype)


def _pick_hw_tile(C, hw, itemsize, target_bytes):
    """Lane-dense (multiple-of-128) spatial tile near target_bytes per block.
    Works for any hw: the grid uses cdiv and the kernels mask / drop the padded tail."""
    lane_tiles_total = pl.cdiv(hw, _LANE)
    per_lane_tile_bytes = max(1, C * _LANE * itemsize)
    n = max(1, target_bytes // per_lane_tile_bytes)
    n = min(n, lane_tiles_total, _MAX_UNROLL_LANE_TILES)
    return int(n) * _LANE


def _eca_two_pass(xf, w, capacity):
    B, C, hw = xf.shape
    itemsize = xf.dtype.itemsize
    big_vmem = capacity >= (100 << 20)
    # Pass 1 only double-buffers its input block (its output is (1, C, 1)), so it gets a
    # larger tile than pass 2, which pipelines both input and output blocks. Larger tiles
    # amortize the ~0.35 us per-grid-step overhead against v7x's 3.2 TB/s HBM.
    tile1 = _pick_hw_tile(C, hw, itemsize, (16 << 20) if big_vmem else (8 << 20))
    tile2 = _pick_hw_tile(C, hw, itemsize, (8 << 20) if big_vmem else (4 << 20))
    n_t1 = pl.cdiv(hw, tile1)
    n_t2 = pl.cdiv(hw, tile2)
    blk1 = C * tile1 * itemsize
    blk2 = C * tile2 * itemsize

    # Pass 1: pooled mean over spatial tiles -> sigmoid(conv) gate, shape (B, C, 1).
    gate = pl.pallas_call(
        functools.partial(_eca_pool_gate_kernel, hw=hw),
        out_shape=jax.ShapeDtypeStruct((B, C, 1), jnp.float32),
        grid=(B, n_t1),
        in_specs=[
            pl.BlockSpec(memory_space=pltpu.MemorySpace.SMEM),
            pl.BlockSpec((1, C, tile1), lambda b, t: (b, 0, t)),
        ],
        out_specs=pl.BlockSpec((1, C, 1), lambda b, t: (b, 0, 0)),
        scratch_shapes=[pltpu.VMEM((1, C, _LANE), jnp.float32)],
        compiler_params=pltpu.CompilerParams(
            dimension_semantics=("parallel", "arbitrary"),
            vmem_limit_bytes=_vmem_limit(2 * blk1 + C * _LANE * 4, capacity)),
    )(w, xf)

    # Pass 2: stream lane-dense spatial tiles and rescale by the per-channel gate.
    return pl.pallas_call(
        _eca_scale_kernel,
        out_shape=jax.ShapeDtypeStruct((B, C, hw), xf.dtype),
        grid=(B, n_t2),
        in_specs=[
            pl.BlockSpec((1, C, 1), lambda b, t: (b, 0, 0)),
            pl.BlockSpec((1, C, tile2), lambda b, t: (b, 0, t)),
        ],
        out_specs=pl.BlockSpec((1, C, tile2), lambda b, t: (b, 0, t)),
        compiler_params=pltpu.CompilerParams(
            dimension_semantics=("parallel", "parallel"),
            vmem_limit_bytes=_vmem_limit(4 * blk2, capacity)),
    )(gate, xf)


def ca_module(x, w, *, single_pass_vmem_budget=None):
    """ECA forward. x: (B, C, H, W); w: (K_SIZE,) conv1d weights (no bias)."""
    B, C, H, W = x.shape
    hw = H * W
    xf = x.reshape(B, C, hw)
    capacity = _tpu_vmem_capacity_bytes()
    if single_pass_vmem_budget is None:
        # ~104 MiB on 128-MiB-VMEM parts (v5e/v6e), ~40 MiB on v7x (64 MiB/TC).
        single_pass_vmem_budget = max(32 << 20, capacity - (24 << 20))
    block_bytes = C * hw * x.dtype.itemsize
    # Single pass keeps one batch element's (C, HW) slab resident (double-buffered
    # input + output blocks -> 4x block bytes); otherwise use the tiled two-pass.
    fits_single = 4 * block_bytes + (2 << 20) <= single_pass_vmem_budget
    # v7x-class parts (<=64 MiB VMEM/TC) have 2 TensorCores sharing the grid; with B == 1
    # the single-pass grid leaves one core idle, so for non-trivial slabs the tiled path
    # (B*n_t steps, both axes parallel) wins despite its 3x HBM traffic.
    prefer_tiled_for_parallelism = (
        B == 1 and capacity <= (72 << 20) and block_bytes > (1 << 20))
    if fits_single and not prefer_tiled_for_parallelism:
        out = _eca_single_pass(xf, w, capacity)
    else:
        out = _eca_two_pass(xf, w, capacity)
    return out.reshape(B, C, H, W)


def ca_module_ref(x, w):
    """Plain-JAX reference matching the PyTorch forward exactly (f32)."""
    B, C, H, W = x.shape
    y = jnp.mean(x, axis=(2, 3))                       # (B, C) == avg_pool(1)
    pad = (K_SIZE - 1) // 2
    yp = jnp.pad(y, ((0, 0), (pad, pad)))              # zero padding along C
    conv = jnp.zeros_like(y)
    for j in range(K_SIZE):
        conv = conv + w[j] * yp[:, j:j + C]
    s = jax.nn.sigmoid(conv)                           # (B, C)
    return x * s[:, :, None, None]


if __name__ == "__main__":
    key = jax.random.PRNGKey(0)
    kx, kw = jax.random.split(key)

    # Conv1d(1, 1, k, bias=False) weight: PyTorch shape (1,1,k) -> flat (k,).
    bound = 1.0 / (1 * K_SIZE) ** 0.5
    w = jax.random.uniform(kw, (K_SIZE,), dtype=jnp.float32,
                           minval=-bound, maxval=bound)

    def _check(x, atol, rtol, **kwargs):
        out = jax.block_until_ready(ca_module(x, w, **kwargs))
        ref = ca_module_ref(x.astype(jnp.float32), w)
        assert out.shape == x.shape and out.dtype == x.dtype
        assert jnp.allclose(out.astype(jnp.float32), ref, atol=atol, rtol=rtol)

    # 1) base shape (single-pass path), f32
    x1 = jax.random.normal(kx, (2, 4, 16, 16), dtype=jnp.float32)
    _check(x1, 1e-5, 1e-5)

    # 2) HW not a multiple of 128, C not a multiple of 8 (full-extent block, masked stores)
    x2 = jax.random.normal(jax.random.fold_in(kx, 1), (2, 20, 7, 7), jnp.float32)
    _check(x2, 1e-5, 1e-5)

    # 3) force the spatially-tiled two-pass path (hw divisible by 128)
    x3 = jax.random.normal(jax.random.fold_in(kx, 2), (2, 8, 16, 32), jnp.float32)
    _check(x3, 1e-5, 1e-5, single_pass_vmem_budget=0)

    # 4) force two-pass with a padded/masked spatial tail (hw = 300)
    x4 = jax.random.normal(jax.random.fold_in(kx, 3), (2, 8, 10, 30), jnp.float32)
    _check(x4, 1e-5, 1e-5, single_pass_vmem_budget=0)

    # 5) bf16 I/O (f32 mean + gate, native bf16 rescale)
    x5 = jax.random.normal(jax.random.fold_in(kx, 4),
                           (2, 8, 16, 16), jnp.float32).astype(jnp.bfloat16)
    _check(x5, 5e-2, 5e-2)

    print("KERNEL_OK")
</pallas_src>

<mosaic_0001>
module attributes {stable_mosaic.version = 11 : i64} {
  func.func @_eca_fused_kernel(%arg0: i32, %arg1: memref<3xf32, #tpu.memory_space<smem>>, %arg2: memref<1x4x256xf32, #tpu.memory_space<vmem>>, %arg3: memref<1x4x256xf32, #tpu.memory_space<vmem>>) attributes {dimension_semantics = [#tpu.dimension_semantics<parallel>], iteration_bounds = array<i64: 2>, scalar_prefetch = 0 : i64, scratch_operands = 0 : i64, tpu.core_type = #tpu.core_type<tc>, window_params = [{transform_indices = @transform_0, window_bounds = array<i64: 3>}, {transform_indices = @transform_1, window_bounds = array<i64: 1, 4, 256>}, {transform_indices = @transform_2, window_bounds = array<i64: 1, 4, 256>}]} {
    %c0 = arith.constant 0 : index
    %c0_0 = arith.constant 0 : index
    %c0_1 = arith.constant 0 : index
    %0 = vector.load %arg2[%c0, %c0_0, %c0_1] : memref<1x4x256xf32, #tpu.memory_space<vmem>>, vector<1x4x256xf32>
    %1 = vector.extract_strided_slice %0 {offsets = [0, 0, 0], sizes = [1, 4, 128], strides = [1, 1, 1]} : vector<1x4x256xf32> to vector<1x4x128xf32>
    %2 = vector.extract_strided_slice %0 {offsets = [0, 0, 128], sizes = [1, 4, 128], strides = [1, 1, 1]} : vector<1x4x256xf32> to vector<1x4x128xf32>
    %3 = arith.addf %1, %2 : vector<1x4x128xf32>
    %cst = arith.constant dense<0.000000e+00> : vector<1x4xf32>
    %4 = vector.multi_reduction <add>, %3, %cst [2] : vector<1x4x128xf32> to vector<1x4xf32>
    %cst_2 = arith.constant 2.560000e+02 : f32
    %5 = vector.broadcast %cst_2 : f32 to vector<1x4xf32>
    %6 = arith.divf %4, %5 : vector<1x4xf32>
    %7 = tpu.iota {dimensions = array<i32: 1>} : vector<1x4xi32>
    %cst_3 = arith.constant 0.000000e+00 : f32
    %8 = vector.broadcast %cst_3 : f32 to vector<1x4xf32>
    %c1_i32 = arith.constant 1 : i32
    %9 = tpu.dynamic_rotate %6 by %c1_i32 dim 1 : vector<1x4xf32>, i32 -> vector<1x4xf32>
    %c-1_i32 = arith.constant -1 : i32
    %10 = vector.broadcast %c-1_i32 : i32 to vector<1x4xi32>
    %11 = arith.addi %7, %10 : vector<1x4xi32>
    %c0_i32 = arith.constant 0 : i32
    %12 = vector.broadcast %c0_i32 : i32 to vector<1x4xi32>
    %13 = arith.cmpi sge, %11, %12 : vector<1x4xi32>
    %c-1_i32_4 = arith.constant -1 : i32
    %14 = vector.broadcast %c-1_i32_4 : i32 to vector<1x4xi32>
    %15 = arith.addi %7, %14 : vector<1x4xi32>
    %c4_i32 = arith.constant 4 : i32
    %16 = vector.broadcast %c4_i32 : i32 to vector<1x4xi32>
    %17 = arith.cmpi slt, %15, %16 : vector<1x4xi32>
    %18 = arith.andi %13, %17 : vector<1x4xi1>
    %c0_5 = arith.constant 0 : index
    %19 = memref.load %arg1[%c0_5] : memref<3xf32, #tpu.memory_space<smem>>
    %cst_6 = arith.constant 0.000000e+00 : f32
    %20 = vector.broadcast %cst_6 : f32 to vector<1x4xf32>
    %21 = arith.select %18, %9, %20 : vector<1x4xi1>, vector<1x4xf32>
    %22 = vector.broadcast %19 : f32 to vector<1x4xf32>
    %23 = arith.mulf %22, %21 : vector<1x4xf32>
    %24 = arith.addf %8, %23 : vector<1x4xf32>
    %c0_i32_7 = arith.constant 0 : i32
    %25 = vector.broadcast %c0_i32_7 : i32 to vector<1x4xi32>
    %26 = arith.addi %7, %25 : vector<1x4xi32>
    %c0_i32_8 = arith.constant 0 : i32
    %27 = vector.broadcast %c0_i32_8 : i32 to vector<1x4xi32>
    %28 = arith.cmpi sge, %26, %27 : vector<1x4xi32>
    %c0_i32_9 = arith.constant 0 : i32
    %29 = vector.broadcast %c0_i32_9 : i32 to vector<1x4xi32>
    %30 = arith.addi %7, %29 : vector<1x4xi32>
    %c4_i32_10 = arith.constant 4 : i32
    %31 = vector.broadcast %c4_i32_10 : i32 to vector<1x4xi32>
    %32 = arith.cmpi slt, %30, %31 : vector<1x4xi32>
    %33 = arith.andi %28, %32 : vector<1x4xi1>
    %c1 = arith.constant 1 : index
    %34 = memref.load %arg1[%c1] : memref<3xf32, #tpu.memory_space<smem>>
    %cst_11 = arith.constant 0.000000e+00 : f32
    %35 = vector.broadcast %cst_11 : f32 to vector<1x4xf32>
    %36 = arith.select %33, %6, %35 : vector<1x4xi1>, vector<1x4xf32>
    %37 = vector.broadcast %34 : f32 to vector<1x4xf32>
    %38 = arith.mulf %37, %36 : vector<1x4xf32>
    %39 = arith.addf %24, %38 : vector<1x4xf32>
    %c3_i32 = arith.constant 3 : i32
    %40 = tpu.dynamic_rotate %6 by %c3_i32 dim 1 : vector<1x4xf32>, i32 -> vector<1x4xf32>
    %c1_i32_12 = arith.constant 1 : i32
    %41 = vector.broadcast %c1_i32_12 : i32 to vector<1x4xi32>
    %42 = arith.addi %7, %41 : vector<1x4xi32>
    %c0_i32_13 = arith.constant 0 : i32
    %43 = vector.broadcast %c0_i32_13 : i32 to vector<1x4xi32>
    %44 = arith.cmpi sge, %42, %43 : vector<1x4xi32>
    %c1_i32_14 = arith.constant 1 : i32
    %45 = vector.broadcast %c1_i32_14 : i32 to vector<1x4xi32>
    %46 = arith.addi %7, %45 : vector<1x4xi32>
    %c4_i32_15 = arith.constant 4 : i32
    %47 = vector.broadcast %c4_i32_15 : i32 to vector<1x4xi32>
    %48 = arith.cmpi slt, %46, %47 : vector<1x4xi32>
    %49 = arith.andi %44, %48 : vector<1x4xi1>
    %c2 = arith.constant 2 : index
    %50 = memref.load %arg1[%c2] : memref<3xf32, #tpu.memory_space<smem>>
    %cst_16 = arith.constant 0.000000e+00 : f32
    %51 = vector.broadcast %cst_16 : f32 to vector<1x4xf32>
    %52 = arith.select %49, %40, %51 : vector<1x4xi1>, vector<1x4xf32>
    %53 = vector.broadcast %50 : f32 to vector<1x4xf32>
    %54 = arith.mulf %53, %52 : vector<1x4xf32>
    %55 = arith.addf %39, %54 : vector<1x4xf32>
    %56 = arith.negf %55 : vector<1x4xf32>
    %57 = math.exp %56 : vector<1x4xf32>
    %cst_17 = arith.constant 1.000000e+00 : f32
    %58 = vector.broadcast %cst_17 : f32 to vector<1x4xf32>
    %59 = arith.addf %58, %57 : vector<1x4xf32>
    %60 = arith.divf %58, %59 : vector<1x4xf32>
    %61 = vector.shape_cast %60 : vector<1x4xf32> to vector<1x4x1xf32>
    %62 = vector.broadcast %61 : vector<1x4x1xf32> to vector<1x4x256xf32>
    %63 = arith.mulf %0, %62 : vector<1x4x256xf32>
    %c0_18 = arith.constant 0 : index
    %c0_19 = arith.constant 0 : index
    %c0_20 = arith.constant 0 : index
    %64 = vector.load %arg3[%c0_18, %c0_19, %c0_20] : memref<1x4x256xf32, #tpu.memory_space<vmem>>, vector<1x4x256xf32>
    tpu.vector_store %arg3[%c0_18, %c0_19, %c0_20], %63 {strides = array<i32>} : memref<1x4x256xf32, #tpu.memory_space<vmem>>, vector<1x4x256xf32>,
    return
  }
  func.func @transform_0(%arg0: i32) -> i32 {
    %c0_i32 = arith.constant 0 : i32
    %c0_i32_0 = arith.constant 0 : i32
    return %c0_i32 : i32
  }
  func.func @transform_1(%arg0: i32) -> (i32, i32, i32) {
    %c0_i32 = arith.constant 0 : i32
    %c0_i32_0 = arith.constant 0 : i32
    %c0_i32_1 = arith.constant 0 : i32
    return %arg0, %c0_i32, %c0_i32_0 : i32, i32, i32
  }
  func.func @transform_2(%arg0: i32) -> (i32, i32, i32) {
    %c0_i32 = arith.constant 0 : i32
    %c0_i32_0 = arith.constant 0 : i32
    %c0_i32_1 = arith.constant 0 : i32
    return %arg0, %c0_i32, %c0_i32_0 : i32, i32, i32
  }
}

</mosaic_0001>

<bundles_post_ra>
// kernel: tpu_custom_call.1
= control target key start
LH: loop header
LB: loop body
LE: loop exit
PB: predicated region body
PF: predicated region fallthrough
CT: control target
= control target key end

     0   :  { %7 = vsyncpa [#allocation5], 0  ;;  %s724_s0 = inlined_call_operand.hbm [shape: f32[3], index: 0, kind: input, shape index: {}]   ;;  %s725_s1 = inlined_call_operand.hbm [shape: f32[2,4,256], index: 1, kind: input, shape index: {}]   ;;  %s726_s2 = inlined_call_operand.hbm [shape: f32[2,4,256], index: 2, kind: output, shape index: {}]  }
   0x1   :  { %8 = vsyncpa [#allocation3], 0 }
   0x2   :  { %10 = vsyncpa [#allocation3 + $0x1], 0 }
   0x3   :  { %11 = vsyncpa [#allocation4], 0 }
   0x4   :  { %13 = vsyncpa [#allocation4 + $0x1], 0  ;;  %s569_s9 = smov 0   ;;  %s571_s10 = smov 0  }
   0x5   :  { %s573_s11 = smov 0   ;;  %s575_s12 = smov 0  }
   0x6 LB: > { %s590_s13 = sadd.s32 4294967295, %s545_s12   ;;  %s352_s14 = sadd.s32 4294967294, %s545_s12   ;;  %s545_s12 = sphi %s575_s12, %s746_s12   ;;  %s541_s11 = sphi %s573_s11, %s745_s11   ;;  %s537_s10 = sphi %s571_s10, %s744_s10   ;;  %s533_s9 = sphi %s569_s9, %s743_s9  }
   0x7   : > { %p60_p0 = scmp.ne.s32.totalorder %s537_s10, %s533_s9  ;;  %p727_p1 = scmp.eq.s32.totalorder %s590_s13, 0 }
   0x8   : > { %p84_p2 = scmp.eq.s32.totalorder %s590_s13, 1  ;;  %p90_p3 = scmp.eq.s32.totalorder %s352_s14, 1 }
   0x9   : > { %p599_p4 = por %p727_p1, %p60_p0  ;;  %p353_p5 = scmp.ge.s32.totalorder %s545_s12, 1 }
   0xa   : > { %p604_p6 = por %p90_p3, %p60_p0  ;;  %p97_p7 = scmp.lt.s32.totalorder %s545_s12, 3 }
   0xb   : > { %s731_s15 = scalar_select %p599_p4, 1, 0 }
   0xc   : > { %s732_s16 = scalar_select %p604_p6, 1, 0 }
   0xd   : > { %p609_p8 = pnand %p353_p5, %p97_p7  ;;  %s615_s18 = sadd.s32 1, %s545_s12  }
   0xe   : > { %s44_s19 = ssub.s32 %s545_s12, %s615_s18  ;;  %s47_s20 = sadd.s32 1, %s541_s11 }
   0xf   : > { %s733_s17 = scalar_select %p609_p8, 1, 0 }
  0x10   : > { %p381_p10 = pneg %p609_p8  ;;  %p45_p12 = scmp.eq.s32.totalorder %s44_s19, 0 }
  0x11   : > { %p54_p13 = scmp.ne.s32.totalorder %s541_s11, %s537_s10  ;;  %p55_p0 = scmp.eq.s32.totalorder %s545_s12, 0 }
  0x12   : > { %p382_p11 = pnand %p381_p10, %p727_p1  ;;  %p394_p3 = scmp.lt.s32.totalorder %s545_s12, 2 }
  0x13   : > { %s547_s21 = smov [#allocation2]   ;;  %p56_p5 = por %p55_p0, %p54_p13 }
  0x14   : > { %384 = dma.hbm_to_smem (!%p382_p11), %s724_s0, 16, %s547_s21, [#allocation5]  }
  0x15   : > { %s632_s24 = scalar_select %p45_p12, %s541_s11, %s47_s20  }
  0x16   : > { %p636_p7 = por %p84_p2, %p54_p13  ;;  %s119_s26 = sand.u32 1, %s541_s11  }
  0x17   : > { %s371_s27 = sshll.u32 %s545_s12, 7  ;;  %s356_s28 = sshll.u32 %s119_s26, 3 }
  0x18   : > { %s734_s25 = scalar_select %p636_p7, 1, 0 }
  0x19   : > { %s645_s3 = scalar_lea.hbm %s725_s1, %s371_s27  ;;  %s123_s4 = scalar_lea.vmem [#allocation6], %s356_s28 }
  0x1a   : > { %s131_s5 = sshll.u32 %s123_s4, 4  ;;  %p647_p10 = pnand %p394_p3, %p56_p5  ;;  %s132_s5 = int_to_ptr.vmem [resolvable:$true] %s131_s5 }
  0x1b   : > { %s120_s7 = scalar_lea.sflag [#allocation3], %s119_s26  ;;  %s449_s8 = scalar_lea.hbm %s645_s3, 128 }
  0x1c   : > { %p450_p2 = scmp.ne.s32.totalorder %s645_s3, %s449_s8  ;;  %p451_p11 = pneg %p647_p10 }
  0x1d   : > { %s454_s20 = scalar_lea.hbm %s725_s1, 256  ;;  %p455_p0 = scmp.lt.s32.totalorder %s645_s3, %s725_s1 }
  0x1e   : > { %p452_p12 = pnand %p451_p11, %p450_p2  ;;  %p456_p3 = scmp.lt.s32.totalorder %s454_s20, %s449_s8 }
  0x20   : > { %p453_p13 = pneg %p452_p12  ;;  %p457_p5 = por %p456_p3, %p455_p0 }
  0x22   : > { %p458_p9 = pnand %p457_p5, %p453_p13 }
  0x24   : > { %461 = shalt.err (!%p458_p9)
}
  0x25   : > { %s462_s23 = scalar_lea.vmem %s132_s5, 128  ;;  %s548_s26 = smov [#allocation6]  }
  0x26   : > { %p463_p1 = scmp.ne.s32.totalorder %s132_s5, %s462_s23  ;;  %s467_s27 = sshll.u32 %s548_s26, 4  ;;  %s468_s27 = int_to_ptr.vmem [resolvable:$false] %s467_s27 }
  0x27   : > { %s469_s28 = scalar_lea.vmem %s468_s27, 256  ;;  %p470_p2 = scmp.lt.s32.totalorder %s132_s5, %s468_s27 }
  0x28   : > { %p465_p6 = pnand %p463_p1, %p451_p11  ;;  %p471_p12 = scmp.lt.s32.totalorder %s469_s28, %s462_s23 }
  0x2a   : > { %p466_p7 = pneg %p465_p6  ;;  %p472_p4 = por %p471_p12, %p470_p2 }
  0x2c   : > { %p473_p8 = pnand %p472_p4, %p466_p7 }
  0x2e   : > { %476 = shalt.err (!%p473_p8)
}
  0x2f   : > { %388 = dma.hbm_to_vmem [thread:$0]  (!%p647_p10), %s645_s3, 128, %s132_s5, %s120_s7  }
  0x30   : > { %p736_p13 = scmp.ne.s32.totalorder %s733_s17, 0 }
  0x31   : > { %p737_p9 = scmp.eq.s32.totalorder (!%p736_p13), %s590_s13, 0 }
  0x32   : > { %140 = sbr.rel (%p736_p13) target bundleno = 732 (0x2dc), region = 28 }
  0x37   : > { %520 = dma.done.wait (%p737_p9), [#allocation5], 16   ;;  %p738_p1 = pmov %p737_p9 }
  0x38   : > { %s672_s29 = sand.u32 1, %s537_s10   ;;  %p739_p4 = scmp.ne.s32.totalorder %s731_s15, 0 }
  0x39   : > { %522 = vsyncadd (%p738_p1), [#allocation5], 4294967280  ;;  %s361_s30 = sshll.u32 %s672_s29, 3  ;;  %s147_s4 = scalar_lea.sflag [#allocation3], %s672_s29 }
  0x3a   : > { %s150_s3 = scalar_lea.vmem [#allocation6], %s361_s30 }
  0x3b   : > { %524 = dma.done.wait (%p739_p4), %s147_s4, 128  }
  0x3c   : > { %526 = vsyncadd (%p739_p4), %s147_s4, 4294967168 }
  0x3d   : > { %155 = sfence }
  0x3e   : > { %v682_v0 = vld [vmem:[%s150_s3] sm:$0xff]  ;;  %vm177_vm0 = vcmask 1043456   ;;  %v183_v4 = vlaneseq  ;;  %s549_s17 = smov 4   ;;  %vm191_vm1 = vcmask 1047584   ;;  %s550_s15 = smov 125  }
  0x3f   : > { %v174_v1 = vrot.slane %v682_v0, 4  ;;  %s551_s5 = smov 127   ;;  %s202_s6 = sld [smem:[#allocation2]]  ;;  %v552_v36 = vmov 839922192  }
  0x40   : > { %v184_v5 = vand.u32 127, %v183_v4  ;;  %v187_v6 = vshrl.u32 %v183_v4, 7  ;;  %s363_s7 = sld [smem:[#allocation2 + $0x1]]  ;;  %v246_v37 = vunpack.c.l.s4 %v552_v36  ;;  %s372_s14 = sshll.u32 %s590_s13, 7 }
  0x41   : > { %v176_v2 = vadd.f32 %v174_v1, %v682_v0  ;;  %s364_s8 = sld [smem:[#allocation2 + $0x2]]  ;;  %s171_s19 = scalar_lea.vmem [#allocation7], %s361_s30 }
  0x42   : > { %v188_v7 = vsub.s32 %v184_v5, %v187_v6  ;;  %v198_v15 = vadd.s32 4294967295, %v184_v5  ;;  %vm212_vm5 = vcmp.lt.s32.totalorder %v184_v5, 4  ;;  %v219_v16 = vadd.s32 1, %v184_v5  ;;  %s270_s20 = sshll.u32 %s171_s19, 4  ;;  %s268_s23 = scalar_lea.hbm %s726_s2, %s372_s14  ;;  %s271_s20 = int_to_ptr.vmem [resolvable:$true] %s270_s20 }
  0x43   : > { %v178_v3 = vsel %vm177_vm0, %v176_v2, 0.0  ;;  %v239_v33 = vsub.s32 0, %v187_v6  ;;  %v247_v38 = vunpack.c.0.s8 %v246_v37  ;;  %s256_s26 = scalar_lea.sflag [#allocation4], %s672_s29  ;;  %s477_s27 = scalar_lea.vmem %s271_s20, 128 }
  0x44   : > { %179 = vadd.xlane.f32.xlu0 %v178_v3  ;;  %vm199_vm2 = vcmp.ge.s32.totalorder %v198_v15, 0  ;;  %vm200_vm3 = vcmp.lt.s32.totalorder %v198_v15, 4  ;;  %vm221_vm6 = vcmp.lt.s32.totalorder %v219_v16, 4  ;;  %p478_p6 = scmp.ne.s32.totalorder %s271_s20, %s477_s27  ;;  %p740_p8 = scmp.ne.s32.totalorder %s734_s25, 0 }
  0x45   : > { %vm201_vm4 = vmand %vm199_vm2, %vm200_vm3  ;;  %v208_v17 = vstv %s202_s6  ;;  %v250_v39 = vsub.s32 %v247_v38, %v187_v6  ;;  %s553_s28 = smov [#allocation7]  }
  0x46   : > { %v216_v19 = vstv %s363_s7  ;;  %p479_p7 = pnand %p478_p6, %p740_p8  ;;  %s481_s13 = sshll.u32 %s553_s28, 4  ;;  %s482_s13 = int_to_ptr.vmem [resolvable:$false] %s481_s13 }
  0x47   : > { %v228_v23 = vstv %s364_s8  ;;  %s483_s30 = scalar_lea.vmem %s482_s13, 256  ;;  %p484_p11 = scmp.lt.s32.totalorder %s271_s20, %s482_s13 }
  0x48   : > { %p480_p10 = pneg %p479_p7  ;;  %p485_p0 = scmp.lt.s32.totalorder %s483_s30, %s477_s27 }
  0x4a   : > { %p486_p3 = por %p485_p0, %p484_p11 }
  0x4c   : > { %p487_p5 = pnand %p486_p3, %p480_p10 }
  0xcd   : > { %v180_v8 = vpop.xlane.xlu0 %179 }
  0xce   : > { %v182_v9 = vmul.f32 0.00390625, %v180_v8 }
  0xd0   : > { %v189_v10 = vrot.slane %v182_v9, %v188_v7 }
  0xd2   : > { %192 = vrot.lane.b32.xlu0 %v189_v10, %s549_s17  ;;  %v215_v21 = vsel %vm212_vm5, %v189_v10, 0.0 }
  0xd3   : > { %v217_v24 = vmul.f32 %v216_v19, %v215_v21 }
 0x144   : > { %v193_v11 = vpop.permute.xlu0 %192 }
 0x145   : > { %v194_v12 = vsel %vm191_vm1, %v193_v11, %v189_v10 }
 0x146   : > { %195 = vrot.lane.b32.xlu1 %v194_v12, %s549_s17 }
 0x1b8   : > { %v196_v13 = vpop.permute.xlu1 %195 }
 0x1b9   : > { %v197_v14 = vsel %vm191_vm1, %v196_v13, %v189_v10 }
 0x1ba   : > { %204 = vrot.lane.b32.xlu1 %v197_v14, %s550_s15 }
 0x1be   : > { %224 = vrot.lane.b32.xlu1 %v197_v14, %s551_s5 }
 0x22c   : > { %v205_v18 = vpop.permute.xlu1 %204 }
 0x22d   : > { %v207_v20 = vsel %vm201_vm4, %v205_v18, 0.0 }
 0x22e   : > { %v209_v22 = vmul.f32 %v208_v17, %v207_v20 }
 0x230   : > { %v225_v25 = vpop.permute.xlu1 %224  ;;  %v218_v27 = vadd.f32 %v217_v24, %v209_v22 }
 0x231   : > { %v227_v26 = vsel %vm221_vm6, %v225_v25, 0.0 }
 0x232   : > { %v229_v28 = vmul.f32 %v228_v23, %v227_v26 }
 0x234   : > { %v230_v29 = vadd.f32 %v229_v28, %v218_v27 }
 0x236   : > { %v365_v30 = vmul.f32 -1.442695, %v230_v29 }
 0x238   : > { %434 = vpow2.f32 %v365_v30 }
 0x245   : > { %v435_v31 = vpop.eup %434 }
 0x246   : > { %v234_v32 = vadd.f32 1.0, %v435_v31 }
 0x248   : > { %436 = vrcp.f32 %v234_v32 }
 0x255   : > { %v437_v34 = vpop.eup %436 }
 0x256   : > { %v240_v35 = vrot.slane %v437_v34, %v239_v33 }
 0x258   : > { %242 = vbcast.lane.b32.xlu1 %v240_v35, 256 }
 0x2ca   : > { %v243_v40 = vpop.permute.xlu1 %242 }
 0x2cb   : > { %v251_v41 = vrot.slane %v243_v40, %v250_v39 }
 0x2cd   : > { %v253_v42 = vmul.f32 %v251_v41, %v682_v0 }
 0x2cf   : > { %254 = vst [vmem:[%s171_s19] sm:$0xff] %v253_v42 }
 0x2d0   : > { %490 = shalt.err (!%p487_p5)
}
 0x2d1   : > { %s491_s4 = scalar_lea.hbm %s268_s23, 128  ;;  %s495_s17 = scalar_lea.hbm %s726_s2, 256 }
 0x2d2   : > { %p492_p2 = scmp.ne.s32.totalorder %s268_s23, %s491_s4  ;;  %p496_p9 = scmp.lt.s32.totalorder %s268_s23, %s726_s2 }
 0x2d3   : > { %p497_p1 = scmp.lt.s32.totalorder %s495_s17, %s491_s4 }
 0x2d4   : > { %p493_p12 = pnand %p492_p2, %p740_p8 }
 0x2d5   : > { %p498_p4 = por %p497_p1, %p496_p9 }
 0x2d6   : > { %p494_p13 = pneg %p493_p12 }
 0x2d8   : > { %p499_p6 = pnand %p498_p4, %p494_p13 }
 0x2da   : > { %502 = shalt.err (!%p499_p6)
}
 0x2db   : > { %379 = dma.vmem_to_hbm [thread:$0]  (%p740_p8), %s271_s20, 128, %s268_s23, %s256_s26  }
 0x2dc PF: > { %s282_s6 = sand.u32 1, %s533_s9   ;;  %p741_p7 = scmp.ne.s32.totalorder %s732_s16, 0 }
 0x2dd   : > { %p742_p10 = scmp.ge.s32.totalorder %s545_s12, 2  ;;  %s283_s7 = scalar_lea.sflag [#allocation4], %s282_s6 }
 0x2df   : > { %p390_p11 = pnand %p742_p10, %p741_p7 }
 0x2e1   : > { %p391_p0 = pneg %p390_p11 }
 0x2e3   : > { %528 = dma.done.wait (%p391_p0), %s283_s7, 128  }
 0x2e4   : > { %530 = vsyncadd (%p391_p0), %s283_s7, 4294967168  ;;  %p16_p3 = scmp.ge.s32.totalorder %s615_s18, 4   ;;  %s743_s9 = smov %s537_s10 }
 0x2e5   : > { %s744_s10 = smov %s541_s11  ;;  %s745_s11 = smov %s632_s24 }
 0x2e6   : > { %s746_s12 = smov %s615_s18  ;;  %18 = sbr.rel (!%p16_p3) target bundleno = 6 (0x6), region = 78 }
 0x2eb   :  { %288 = vsyncpa [#allocation3], 1 }
 0x2ec   :  { %290 = vsyncpa [#allocation3 + $0x1], 1 }
 0x2ed   :  { %291 = vsyncpa [#allocation4], 1 }
 0x2ee   :  { %293 = vsyncpa [#allocation4 + $0x1], 1 }
 0x2ef   :  { %294 = vsyncpa [#allocation5], 1 }
 0x2f0   :  { %296 = vsyncpa [#allocation5 + $0x1], 1 }

</bundles_post_ra>
